<compile_context>
chip_gen: v5e
topology: v5e:2x2
jax: 0.10.0
libtpu: 0.0.40
codegen_flags: <defaults>
</compile_context>

<pallas_src>
import jax
import jax.numpy as jnp
from jax.experimental import pallas as pl
from jax.experimental.pallas import tpu as pltpu


# ---------------------------------------------------------------------------
# Kernel (transposed layout: activations are (features, TB), batch on lanes)
# ---------------------------------------------------------------------------

def _mlp_t_kernel(x_ref, w1, b1, w2, b2, w3, b3, w4, b4, out_ref):
    """x_ref: (3, TB). Weights (out, in), biases (out, 1). out_ref: (4, TB)."""

    def layer(h, w_ref, b_ref, relu):
        w = w_ref[...]
        # matmul operands in compute dtype, f32 accumulation + f32 elementwise
        z = jnp.dot(w, h.astype(w.dtype), preferred_element_type=jnp.float32)
        z = z + b_ref[...]
        return jnp.maximum(z, 0.0) if relu else z

    h = layer(x_ref[...], w1, b1, True)    # (64, TB) f32
    h = layer(h, w2, b2, True)             # (32, TB) f32
    h = layer(h, w3, b3, True)             # (16, TB) f32
    # nn.Dropout(0.3): identity in eval mode.
    out_ref[...] = layer(h, w4, b4, False).astype(out_ref.dtype)  # (4, TB)


# ---------------------------------------------------------------------------
# Wrapper
# ---------------------------------------------------------------------------

def _round_up(n, m):
    return (n + m - 1) // m * m


def fold_params(params, eps=1e-5, compute_dtype=jnp.bfloat16):
    """Fold eval-mode BatchNorm + linear bias into transposed (W', b')."""
    (w1, b1, g1, be1, m1, v1,
     w2, b2, g2, be2, m2, v2,
     w3, b3, g3, be3, m3, v3,
     w4, b4) = params

    def fold(w, b, gamma, beta, mean, var):
        s = gamma / jnp.sqrt(var + eps)
        wt = (w.T * s[:, None]).astype(compute_dtype)                # (out, in)
        bf = ((b - mean) * s + beta).astype(jnp.float32).reshape(-1, 1)
        return wt, bf

    w1f, b1f = fold(w1, b1, g1, be1, m1, v1)
    w2f, b2f = fold(w2, b2, g2, be2, m2, v2)
    w3f, b3f = fold(w3, b3, g3, be3, m3, v3)
    w4t = w4.T.astype(compute_dtype)                                  # (4, 16)
    b4f = b4.astype(jnp.float32).reshape(-1, 1)
    return (w1f, b1f, w2f, b2f, w3f, b3f, w4t, b4f)


def study_duration_predictor(x, params, *, block_rows=16384,
                             compute_dtype=jnp.bfloat16):
    """x: (B, input_dim) float32. Returns logits (B, 4) float32."""
    folded = fold_params(params, compute_dtype=compute_dtype)
    B, D = x.shape
    n_out = folded[-1].shape[0]   # 4

    LANE = 128
    # Pad the batch only to the lane granule; then split into k equal tiles so
    # padding waste is bounded (< 128*k rows) and tiles are balanced across
    # TensorCores on v7x (dimension_semantics=("parallel",)).
    b_pad = _round_up(max(B, 1), LANE)
    tb_target = max(LANE, _round_up(min(block_rows, b_pad), LANE))
    k = pl.cdiv(b_pad, tb_target)
    tb = _round_up(pl.cdiv(b_pad, k), LANE)
    b_full = k * tb

    xt = x.T.astype(compute_dtype)                       # (D, B), lane-dense
    if b_full != B:
        xt = jnp.pad(xt, ((0, 0), (0, b_full - B)))

    x_spec = pl.BlockSpec((D, tb), lambda i: (0, i))
    # Params: full-array blocks with constant index_map -> stay VMEM-resident.
    param_specs = [pl.BlockSpec(p.shape, lambda i: (0, 0)) for p in folded]
    out_spec = pl.BlockSpec((n_out, tb), lambda i: (0, i))

    # VMEM budget for this tile (8-sublane padded x/out, double-buffered) plus
    # f32 intermediates; capped below v7x's 64 MiB physical VMEM.
    itemsize = jnp.dtype(compute_dtype).itemsize
    est = (2 * 8 * tb * itemsize        # x block (3,tb) -> 8 sublanes, 2 bufs
           + 2 * 8 * tb * 4             # out block (4,tb) f32, 2 bufs
           + (64 + 32 + 16) * tb * 4    # h1..h3 intermediates, f32
           + (2 << 20))                 # params + slack
    vmem_limit = int(min(max(2 * est, 16 << 20), 56 << 20))

    out = pl.pallas_call(
        _mlp_t_kernel,
        out_shape=jax.ShapeDtypeStruct((n_out, b_full), jnp.float32),
        grid=(k,),
        in_specs=[x_spec] + param_specs,
        out_specs=out_spec,
        compiler_params=pltpu.CompilerParams(
            dimension_semantics=("parallel",),
            vmem_limit_bytes=vmem_limit),
    )(xt, *folded)

    return out[:, :B].T                                   # (B, 4) float32


# ---------------------------------------------------------------------------
# Parameter init + pure-JAX reference (for the self-test)
# ---------------------------------------------------------------------------

def init_params(key, input_dim=3):
    """Deterministic init mimicking nn.Linear / nn.BatchNorm1d defaults."""
    def linear(key, fan_in, fan_out):
        kw, kb = jax.random.split(key)
        bound = 1.0 / jnp.sqrt(fan_in)
        w = jax.random.uniform(kw, (fan_in, fan_out), jnp.float32, -bound, bound)
        b = jax.random.uniform(kb, (fan_out,), jnp.float32, -bound, bound)
        return w, b

    def bn(n):
        return (jnp.ones((n,), jnp.float32),   # gamma
                jnp.zeros((n,), jnp.float32),  # beta
                jnp.zeros((n,), jnp.float32),  # running_mean
                jnp.ones((n,), jnp.float32))   # running_var

    k1, k2, k3, k4 = jax.random.split(key, 4)
    w1, b1 = linear(k1, input_dim, 64)
    w2, b2 = linear(k2, 64, 32)
    w3, b3 = linear(k3, 32, 16)
    w4, b4 = linear(k4, 16, 4)
    g1, be1, m1, v1 = bn(64)
    g2, be2, m2, v2 = bn(32)
    g3, be3, m3, v3 = bn(16)
    return (w1, b1, g1, be1, m1, v1,
            w2, b2, g2, be2, m2, v2,
            w3, b3, g3, be3, m3, v3,
            w4, b4)


def reference_forward(x, params):
    (w1, b1, g1, be1, m1, v1,
     w2, b2, g2, be2, m2, v2,
     w3, b3, g3, be3, m3, v3,
     w4, b4) = params
    eps = 1e-5

    def bn(h, g, be, m, v):
        return (h - m) / jnp.sqrt(v + eps) * g + be

    h = jax.nn.relu(bn(x @ w1 + b1, g1, be1, m1, v1))
    h = jax.nn.relu(bn(h @ w2 + b2, g2, be2, m2, v2))
    h = jax.nn.relu(bn(h @ w3 + b3, g3, be3, m3, v3))
    return h @ w4 + b4


if __name__ == "__main__":
    # Make the pure-JAX reference use true f32 matmuls for the parity checks.
    jax.config.update("jax_default_matmul_precision", "highest")

    key = jax.random.PRNGKey(0)
    kx, kp = jax.random.split(key)

    batch, input_dim = 8, 3
    x = jax.random.normal(kx, (batch, input_dim), dtype=jnp.float32)
    params = init_params(kp, input_dim=input_dim)
    ref = reference_forward(x, params)

    # Small-batch, f32 parity (single grid step).
    logits = jax.block_until_ready(
        study_duration_predictor(x, params, compute_dtype=jnp.float32))
    assert logits.shape == (batch, 4)
    assert jnp.allclose(logits, ref, atol=2e-3, rtol=2e-3), \
        "mismatch vs reference (f32, small)"

    # Default bf16-operand path (f32 accumulation) — looser tolerance.
    logits_bf16 = jax.block_until_ready(study_duration_predictor(x, params))
    assert logits_bf16.shape == (batch, 4)
    assert jnp.allclose(logits_bf16, ref, atol=1e-1, rtol=1e-1), \
        "mismatch vs reference (bf16, small)"

    # Multi-tile grid: exercises padding-to-lane-granule, equal tiles, slicing.
    big_batch = 2500
    xb = jax.random.normal(kx, (big_batch, input_dim), dtype=jnp.float32)
    ref_b = reference_forward(xb, params)
    logits_b = jax.block_until_ready(
        study_duration_predictor(xb, params, block_rows=1024,
                                 compute_dtype=jnp.float32))
    assert logits_b.shape == (big_batch, 4)
    assert jnp.allclose(logits_b, ref_b, atol=2e-3, rtol=2e-3), \
        "mismatch vs reference (f32, grid)"

    print("KERNEL_OK")
</pallas_src>

<mosaic_0001>
module attributes {stable_mosaic.version = 11 : i64} {
  func.func @_mlp_t_kernel(%arg0: i32, %arg1: memref<3x128xf32, #tpu.memory_space<vmem>>, %arg2: memref<64x3xf32, #tpu.memory_space<vmem>>, %arg3: memref<64x1xf32, #tpu.memory_space<vmem>>, %arg4: memref<32x64xf32, #tpu.memory_space<vmem>>, %arg5: memref<32x1xf32, #tpu.memory_space<vmem>>, %arg6: memref<16x32xf32, #tpu.memory_space<vmem>>, %arg7: memref<16x1xf32, #tpu.memory_space<vmem>>, %arg8: memref<4x16xf32, #tpu.memory_space<vmem>>, %arg9: memref<4x1xf32, #tpu.memory_space<vmem>>, %arg10: memref<4x128xf32, #tpu.memory_space<vmem>>) attributes {dimension_semantics = [#tpu.dimension_semantics<parallel>], iteration_bounds = array<i64: 1>, scalar_prefetch = 0 : i64, scratch_operands = 0 : i64, tpu.core_type = #tpu.core_type<tc>, window_params = [{transform_indices = @transform_0, window_bounds = array<i64: 3, 128>}, {pipeline_mode = #tpu.pipeline_mode<synchronous>, transform_indices = @transform_1, window_bounds = array<i64: 64, 3>}, {pipeline_mode = #tpu.pipeline_mode<synchronous>, transform_indices = @transform_2, window_bounds = array<i64: 64, 1>}, {pipeline_mode = #tpu.pipeline_mode<synchronous>, transform_indices = @transform_3, window_bounds = array<i64: 32, 64>}, {pipeline_mode = #tpu.pipeline_mode<synchronous>, transform_indices = @transform_4, window_bounds = array<i64: 32, 1>}, {pipeline_mode = #tpu.pipeline_mode<synchronous>, transform_indices = @transform_5, window_bounds = array<i64: 16, 32>}, {pipeline_mode = #tpu.pipeline_mode<synchronous>, transform_indices = @transform_6, window_bounds = array<i64: 16, 1>}, {pipeline_mode = #tpu.pipeline_mode<synchronous>, transform_indices = @transform_7, window_bounds = array<i64: 4, 16>}, {pipeline_mode = #tpu.pipeline_mode<synchronous>, transform_indices = @transform_8, window_bounds = array<i64: 4, 1>}, {transform_indices = @transform_9, window_bounds = array<i64: 4, 128>}]} {
    %c0 = arith.constant 0 : index
    %c0_0 = arith.constant 0 : index
    %0 = vector.load %arg1[%c0, %c0_0] : memref<3x128xf32, #tpu.memory_space<vmem>>, vector<3x128xf32>
    %c0_1 = arith.constant 0 : index
    %c0_2 = arith.constant 0 : index
    %1 = vector.load %arg2[%c0_1, %c0_2] : memref<64x3xf32, #tpu.memory_space<vmem>>, vector<64x3xf32>
    %cst = arith.constant dense<0.000000e+00> : vector<64x128xf32>
    %2 = tpu.matmul %1, %0, %cst {dimension_numbers = #tpu.dot_dimension_numbers<[1], [0], [0], [1], [0, 0, 1, 1], [], []>, precision = #tpu.contract_precision<fp32>} : vector<64x3xf32>, vector<3x128xf32>, vector<64x128xf32> -> vector<64x128xf32>
    %c0_3 = arith.constant 0 : index
    %c0_4 = arith.constant 0 : index
    %3 = vector.load %arg3[%c0_3, %c0_4] : memref<64x1xf32, #tpu.memory_space<vmem>>, vector<64x1xf32>
    %4 = vector.broadcast %3 : vector<64x1xf32> to vector<64x128xf32>
    %5 = arith.addf %2, %4 : vector<64x128xf32>
    %cst_5 = arith.constant 0.000000e+00 : f32
    %6 = vector.broadcast %cst_5 : f32 to vector<64x128xf32>
    %7 = arith.maximumf %5, %6 : vector<64x128xf32>
    %c0_6 = arith.constant 0 : index
    %c0_7 = arith.constant 0 : index
    %8 = vector.load %arg4[%c0_6, %c0_7] : memref<32x64xf32, #tpu.memory_space<vmem>>, vector<32x64xf32>
    %cst_8 = arith.constant dense<0.000000e+00> : vector<32x128xf32>
    %9 = tpu.matmul %8, %7, %cst_8 {dimension_numbers = #tpu.dot_dimension_numbers<[1], [0], [0], [1], [0, 0, 1, 1], [], []>, precision = #tpu.contract_precision<fp32>} : vector<32x64xf32>, vector<64x128xf32>, vector<32x128xf32> -> vector<32x128xf32>
    %c0_9 = arith.constant 0 : index
    %c0_10 = arith.constant 0 : index
    %10 = vector.load %arg5[%c0_9, %c0_10] : memref<32x1xf32, #tpu.memory_space<vmem>>, vector<32x1xf32>
    %11 = vector.broadcast %10 : vector<32x1xf32> to vector<32x128xf32>
    %12 = arith.addf %9, %11 : vector<32x128xf32>
    %cst_11 = arith.constant 0.000000e+00 : f32
    %13 = vector.broadcast %cst_11 : f32 to vector<32x128xf32>
    %14 = arith.maximumf %12, %13 : vector<32x128xf32>
    %c0_12 = arith.constant 0 : index
    %c0_13 = arith.constant 0 : index
    %15 = vector.load %arg6[%c0_12, %c0_13] : memref<16x32xf32, #tpu.memory_space<vmem>>, vector<16x32xf32>
    %cst_14 = arith.constant dense<0.000000e+00> : vector<16x128xf32>
    %16 = tpu.matmul %15, %14, %cst_14 {dimension_numbers = #tpu.dot_dimension_numbers<[1], [0], [0], [1], [0, 0, 1, 1], [], []>, precision = #tpu.contract_precision<fp32>} : vector<16x32xf32>, vector<32x128xf32>, vector<16x128xf32> -> vector<16x128xf32>
    %c0_15 = arith.constant 0 : index
    %c0_16 = arith.constant 0 : index
    %17 = vector.load %arg7[%c0_15, %c0_16] : memref<16x1xf32, #tpu.memory_space<vmem>>, vector<16x1xf32>
    %18 = vector.broadcast %17 : vector<16x1xf32> to vector<16x128xf32>
    %19 = arith.addf %16, %18 : vector<16x128xf32>
    %cst_17 = arith.constant 0.000000e+00 : f32
    %20 = vector.broadcast %cst_17 : f32 to vector<16x128xf32>
    %21 = arith.maximumf %19, %20 : vector<16x128xf32>
    %c0_18 = arith.constant 0 : index
    %c0_19 = arith.constant 0 : index
    %22 = vector.load %arg8[%c0_18, %c0_19] : memref<4x16xf32, #tpu.memory_space<vmem>>, vector<4x16xf32>
    %cst_20 = arith.constant dense<0.000000e+00> : vector<4x128xf32>
    %23 = tpu.matmul %22, %21, %cst_20 {dimension_numbers = #tpu.dot_dimension_numbers<[1], [0], [0], [1], [0, 0, 1, 1], [], []>, precision = #tpu.contract_precision<fp32>} : vector<4x16xf32>, vector<16x128xf32>, vector<4x128xf32> -> vector<4x128xf32>
    %c0_21 = arith.constant 0 : index
    %c0_22 = arith.constant 0 : index
    %24 = vector.load %arg9[%c0_21, %c0_22] : memref<4x1xf32, #tpu.memory_space<vmem>>, vector<4x1xf32>
    %25 = vector.broadcast %24 : vector<4x1xf32> to vector<4x128xf32>
    %26 = arith.addf %23, %25 : vector<4x128xf32>
    %c0_23 = arith.constant 0 : index
    %c0_24 = arith.constant 0 : index
    %27 = vector.load %arg10[%c0_23, %c0_24] : memref<4x128xf32, #tpu.memory_space<vmem>>, vector<4x128xf32>
    tpu.vector_store %arg10[%c0_23, %c0_24], %26 {strides = array<i32>} : memref<4x128xf32, #tpu.memory_space<vmem>>, vector<4x128xf32>,
    return
  }
  func.func @transform_0(%arg0: i32) -> (i32, i32) {
    %c0_i32 = arith.constant 0 : i32
    %c0_i32_0 = arith.constant 0 : i32
    return %c0_i32, %arg0 : i32, i32
  }
  func.func @transform_1(%arg0: i32) -> (i32, i32) {
    %c0_i32 = arith.constant 0 : i32
    %c0_i32_0 = arith.constant 0 : i32
    %c0_i32_1 = arith.constant 0 : i32
    return %c0_i32, %c0_i32_0 : i32, i32
  }
  func.func @transform_2(%arg0: i32) -> (i32, i32) {
    %c0_i32 = arith.constant 0 : i32
    %c0_i32_0 = arith.constant 0 : i32
    %c0_i32_1 = arith.constant 0 : i32
    return %c0_i32, %c0_i32_0 : i32, i32
  }
  func.func @transform_3(%arg0: i32) -> (i32, i32) {
    %c0_i32 = arith.constant 0 : i32
    %c0_i32_0 = arith.constant 0 : i32
    %c0_i32_1 = arith.constant 0 : i32
    return %c0_i32, %c0_i32_0 : i32, i32
  }
  func.func @transform_4(%arg0: i32) -> (i32, i32) {
    %c0_i32 = arith.constant 0 : i32
    %c0_i32_0 = arith.constant 0 : i32
    %c0_i32_1 = arith.constant 0 : i32
    return %c0_i32, %c0_i32_0 : i32, i32
  }
  func.func @transform_5(%arg0: i32) -> (i32, i32) {
    %c0_i32 = arith.constant 0 : i32
    %c0_i32_0 = arith.constant 0 : i32
    %c0_i32_1 = arith.constant 0 : i32
    return %c0_i32, %c0_i32_0 : i32, i32
  }
  func.func @transform_6(%arg0: i32) -> (i32, i32) {
    %c0_i32 = arith.constant 0 : i32
    %c0_i32_0 = arith.constant 0 : i32
    %c0_i32_1 = arith.constant 0 : i32
    return %c0_i32, %c0_i32_0 : i32, i32
  }
  func.func @transform_7(%arg0: i32) -> (i32, i32) {
    %c0_i32 = arith.constant 0 : i32
    %c0_i32_0 = arith.constant 0 : i32
    %c0_i32_1 = arith.constant 0 : i32
    return %c0_i32, %c0_i32_0 : i32, i32
  }
  func.func @transform_8(%arg0: i32) -> (i32, i32) {
    %c0_i32 = arith.constant 0 : i32
    %c0_i32_0 = arith.constant 0 : i32
    %c0_i32_1 = arith.constant 0 : i32
    return %c0_i32, %c0_i32_0 : i32, i32
  }
  func.func @transform_9(%arg0: i32) -> (i32, i32) {
    %c0_i32 = arith.constant 0 : i32
    %c0_i32_0 = arith.constant 0 : i32
    return %c0_i32, %arg0 : i32, i32
  }
}

</mosaic_0001>

<bundles_post_ra>
// kernel: tpu_custom_call.1
= control target key start
LH: loop header
LB: loop body
LE: loop exit
PB: predicated region body
PF: predicated region fallthrough
CT: control target
= control target key end

     0   :  { %vm115_vm0 = vcmask 1042432   ;;  %v1322_v3 = vmov 0   ;;  %vm90_vm1 = vcmask 23552   ;;  %s1652_s0 = inlined_call_operand.vmem [shape: f32[3,128], index: 0, kind: input, shape index: {}]   ;;  %s1653_s1 = inlined_call_operand.vmem [shape: f32[64,3], index: 1, kind: input, shape index: {}]   ;;  %s1654_s2 = inlined_call_operand.vmem [shape: f32[64,1], index: 2, kind: input, shape index: {}]   ;;  %s1655_s3 = inlined_call_operand.vmem [shape: f32[32,64], index: 3, kind: input, shape index: {}]   ;;  %s1656_s4 = inlined_call_operand.vmem [shape: f32[32,1], index: 4, kind: input, shape index: {}]   ;;  %s1657_s5 = inlined_call_operand.vmem [shape: f32[16,32], index: 5, kind: input, shape index: {}]   ;;  %s1658_s6 = inlined_call_operand.vmem [shape: f32[16,1], index: 6, kind: input, shape index: {}]   ;;  %s1659_s7 = inlined_call_operand.vmem [shape: f32[4,16], index: 7, kind: input, shape index: {}]   ;;  %s1660_s8 = inlined_call_operand.vmem [shape: f32[4,1], index: 8, kind: input, shape index: {}]   ;;  %s1661_s9 = inlined_call_operand.hbm [shape: f32[4,128], index: 9, kind: output, shape index: {}]  }
   0x1   :  { %v47_v0 = vld [vmem:[%s1654_s2 + $0x28] sm:$0xff]  ;;  %v33_v1 = vld [vmem:[%s1652_s0] sm:$0x7]  ;;  %1294 = vset.pattern.permute.xlu1 %v1322_v3  ;;  %1293 = vset.pattern.permute.xlu0 %v1322_v3  ;;  %v49_v5 = vld [vmem:[%s1654_s2 + $0x38] sm:$0xff] }
   0x2   :  { %v34_v2 = vld [vmem:[%s1653_s1] sm:$0xff]  ;;  %v117_v4 = vsel %vm115_vm0, %v33_v1, 0  ;;  %v35_v6 = vld [vmem:[%s1653_s1 + $0x8] sm:$0xff]  ;;  %77 = vperm.xlu1 %1294, %v47_v0   ;;  %87 = vperm.xlu0 %1293, %v49_v5   ;;  %v36_v12 = vld [vmem:[%s1653_s1 + $0x10] sm:$0xff] }
   0x3   :  { %v134_v7 = vand.u32 4294901760, %v117_v4  ;;  %v92_v8 = vsel %vm90_vm1, %v34_v2, 0  ;;  %v95_v9 = vsel %vm90_vm1, %v35_v6, 0  ;;  %1295 = vset.pattern.permute.xlu2 %v1322_v3 }
   0x4   :  { %v1391_v10 = vand.u32 4294901760, %v92_v8  ;;  %v1393_v11 = vand.u32 4294901760, %v95_v9 }
   0x5   :  { %v217_v13 = vsub.f32 %v117_v4, %v134_v7  ;;  %135 = vmatpush.msra.mxu0 %v134_v7  ;;  %330 = vmatpush.msra.mxu3 %v134_v7 }
   0x6   :  { %14 = vsyncpa [#allocation3], 0  ;;  %v137_v14 = vsub.f32 %v92_v8, %v1391_v10  ;;  %v145_v15 = vsub.f32 %v95_v9, %v1393_v11  ;;  %v98_v17 = vsel %vm90_vm1, %v36_v12, 0  ;;  %v46_v19 = vld [vmem:[%s1654_s2 + $0x20] sm:$0xff]  ;;  %v48_v20 = vld [vmem:[%s1654_s2 + $0x30] sm:$0xff]  ;;  %vm518_vm2 = vcmask 523264  }
   0x7   :  { %272 = vmatpush.msra.mxu2 %v217_v13  ;;  %v218_v16 = vand.u32 4294901760, %v217_v13  ;;  %v1407_v24 = vand.u32 4294901760, %v98_v17  ;;  %v37_v27 = vld [vmem:[%s1653_s1 + $0x18] sm:$0xff]  ;;  %v42_v31 = vld [vmem:[%s1654_s2] sm:$0xff]  ;;  %v43_v32 = vld [vmem:[%s1654_s2 + $0x8] sm:$0xff]  ;;  %vm879_vm3 = vcmask 261120  }
   0x8   :  { %275 = vmatmul.f32.vlgmr.msra.gmra.mxu2 %v137_v14  ;;  %v138_v18 = vand.u32 4294901760, %v137_v14  ;;  %v146_v23 = vand.u32 4294901760, %v145_v15  ;;  %v101_v30 = vsel %vm90_vm1, %v37_v27, 0  ;;  %v38_v36 = vld [vmem:[%s1653_s1 + $0x20] sm:$0xff]  ;;  %v45_v39 = vld [vmem:[%s1654_s2 + $0x18] sm:$0xff]  ;;  %v39_v44 = vld [vmem:[%s1653_s1 + $0x28] sm:$0xff] }
   0x9   :  { %v219_v21 = vsub.f32 %v217_v13, %v218_v16  ;;  %398 = vmatpush.msrb.mxu0 %v218_v16  ;;  %v153_v29 = vsub.f32 %v98_v17, %v1407_v24  ;;  %v1421_v35 = vand.u32 4294901760, %v101_v30  ;;  %v104_v40 = vsel %vm90_vm1, %v38_v36, 0  ;;  %67 = vperm.xlu2 %1295, %v45_v39   ;;  %v44_v47 = vld [vmem:[%s1654_s2 + $0x10] sm:$0xff]  ;;  %v41_v59 = vld [vmem:[%s1653_s1 + $0x38] sm:$0xff]  ;;  %v495_v9 = vld [vmem:[%s1656_s4 + $0x8] sm:$0xff]  ;;  %s1282_s20 = sshll.u32 %s1661_s9, 4  ;;  %s1283_s20 = int_to_ptr.hbm [resolvable:$true] %s1282_s20 }
   0xa   :  { %v139_v22 = vsub.f32 %v137_v14, %v138_v18  ;;  %334 = vmatmul.f32.vlgmr.msra.gmra.mxu3 %v138_v18  ;;  %72 = vperm.xlu1 %1294, %v46_v19   ;;  %v147_v28 = vsub.f32 %v145_v15, %v146_v23  ;;  %v1432_v43 = vand.u32 4294901760, %v104_v40  ;;  %v107_v48 = vsel %vm90_vm1, %v39_v44, 0  ;;  %v40_v52 = vld [vmem:[%s1653_s1 + $0x30] sm:$0xff]  ;;  %v497_v12 = vld [vmem:[%s1656_s4 + $0x18] sm:$0xff]  ;;  %v494_v14 = vld [vmem:[%s1656_s4] sm:$0xff] }
   0xb   :  { %v220_v25 = vand.u32 4294901760, %v219_v21  ;;  %82 = vperm.xlu0 %1293, %v48_v20   ;;  %v154_v34 = vand.u32 4294901760, %v153_v29  ;;  %v161_v38 = vsub.f32 %v101_v30, %v1421_v35  ;;  %v176_v51 = vand.u32 4294901760, %v107_v48  ;;  %v496_v8 = vld [vmem:[%s1656_s4 + $0x10] sm:$0xff]  ;;  %v1105_v17 = vld [vmem:[%s1660_s8] sm:$0xf] }
   0xc   :  { %v140_v26 = vand.u32 4294901760, %v139_v22  ;;  %v148_v33 = vand.u32 4294901760, %v147_v28  ;;  %v169_v46 = vsub.f32 %v104_v40, %v1432_v43  ;;  %v110_v55 = vsel %vm90_vm1, %v40_v52, 0 }
   0xd   :  { %221 = vmatpush.msra.mxu1 %v220_v25  ;;  %v155_v37 = vsub.f32 %v153_v29, %v154_v34  ;;  %v162_v42 = vand.u32 4294901760, %v161_v38  ;;  %v177_v54 = vsub.f32 %v107_v48, %v176_v51  ;;  %v184_v58 = vand.u32 4294901760, %v110_v55 }
   0xe   :  { %141 = vmatmul.f32.vlgmr.msra.gmra.mxu0 %v140_v26  ;;  %223 = vmatmul.f32.vlgmr.msra.gmra.mxu1 %v1391_v10  ;;  %v170_v50 = vand.u32 4294901760, %v169_v46  ;;  %v113_v62 = vsel %vm90_vm1, %v41_v59, 0  ;;  %vm1111_vm4 = vcmask 130048  }
   0xf   :  { %448 = vmatpush.msrb.mxu1 %v134_v7  ;;  %v156_v41 = vand.u32 4294901760, %v155_v37  ;;  %v163_v45 = vsub.f32 %v161_v38, %v162_v42  ;;  %v178_v57 = vand.u32 4294901760, %v177_v54  ;;  %v185_v61 = vsub.f32 %v110_v55, %v184_v58 }
  0x10   :  { %280 = vmatmul.f32.gmra.mxu2 %v145_v15  ;;  %v171_v53 = vsub.f32 %v169_v46, %v170_v50  ;;  %v192_v1 = vand.u32 4294901760, %v113_v62 }
  0x11   :  { %62 = vperm.xlu2 %1295, %v44_v47   ;;  %v164_v49 = vand.u32 4294901760, %v163_v45  ;;  %v179_v60 = vsub.f32 %v177_v54, %v178_v57  ;;  %v186_v0 = vand.u32 4294901760, %v185_v61 }
  0x12   :  { %340 = vmatmul.f32.gmra.mxu3 %v146_v23  ;;  %52 = vperm.xlu1 %1294, %v42_v31   ;;  %v172_v56 = vand.u32 4294901760, %v171_v53  ;;  %v193_v3 = vsub.f32 %v113_v62, %v192_v1 }
  0x13   :  { %57 = vperm.xlu0 %1293, %v43_v32   ;;  %v180_v63 = vand.u32 4294901760, %v179_v60  ;;  %v187_v2 = vsub.f32 %v185_v61, %v186_v0 }
  0x14   :  { %v194_v5 = vand.u32 4294901760, %v193_v3 }
  0x15   :  { %v188_v4 = vand.u32 4294901760, %v187_v2 }
  0x16   :  { %149 = vmatmul.f32.gmra.mxu0 %v148_v33  ;;  %227 = vmatmul.f32.gmra.mxu1 %v1393_v11  ;;  %v195_v6 = vsub.f32 %v193_v3, %v194_v5 }
  0x18   :  { %285 = vmatmul.f32.gmra.mxu2 %v153_v29  ;;  %v196_v7 = vand.u32 4294901760, %v195_v6 }
  0x19   :  { %515 = vperm.xlu2 %1295, %v497_v12  }
  0x1a   :  { %346 = vmatmul.f32.gmra.mxu3 %v154_v34  ;;  %505 = vperm.xlu1 %1294, %v495_v9  }
  0x1b   :  { %510 = vperm.xlu0 %1293, %v496_v8  }
  0x1e   :  { %157 = vmatmul.f32.gmra.mxu0 %v156_v41  ;;  %231 = vmatmul.f32.gmra.mxu1 %v1407_v24 }
  0x20   :  { %290 = vmatmul.f32.gmra.mxu2 %v161_v38 }
  0x21   :  { %500 = vperm.xlu2 %1295, %v494_v14  }
  0x22   :  { %352 = vmatmul.f32.gmra.mxu3 %v162_v42 }
  0x26   :  { %165 = vmatmul.f32.gmra.mxu0 %v164_v49  ;;  %235 = vmatmul.f32.gmra.mxu1 %v1421_v35 }
  0x28   :  { %295 = vmatmul.f32.gmra.mxu2 %v169_v46 }
  0x29   :  { %1108 = vperm.xlu2 %1295, %v1105_v17  }
  0x2a   :  { %358 = vmatmul.f32.gmra.mxu3 %v170_v50 }
  0x2e   :  { %173 = vmatmul.f32.gmra.mxu0 %v172_v56  ;;  %239 = vmatmul.f32.gmra.mxu1 %v1432_v43 }
  0x30   :  { %300 = vmatmul.f32.gmra.mxu2 %v177_v54 }
  0x32   :  { %364 = vmatmul.f32.gmra.mxu3 %v178_v57 }
  0x36   :  { %181 = vmatmul.f32.gmra.mxu0 %v180_v63  ;;  %243 = vmatmul.f32.gmra.mxu1 %v176_v51 }
  0x38   :  { %305 = vmatmul.f32.gmra.mxu2 %v185_v61 }
  0x3a   :  { %370 = vmatmul.f32.gmra.mxu3 %v186_v0 }
  0x3e   :  { %189 = vmatmul.f32.gmra.mxu0 %v188_v4  ;;  %247 = vmatmul.f32.gmra.mxu1 %v184_v58 }
  0x40   :  { %310 = vmatmul.f32.gmra.mxu2 %v193_v3 }
  0x42   :  { %376 = vmatmul.f32.gmra.mxu3 %v194_v5 }
  0x46   :  { %197 = vmatmul.f32.gmra.mxu0 %v196_v7  ;;  %251 = vmatmul.f32.gmra.mxu1 %v192_v1 }
  0x4e   :  { %400 = vmatmul.f32.vlgmr.msrb.gmra.mxu0 %v1391_v10  ;;  %450 = vmatmul.f32.vlgmr.msrb.gmra.mxu1 %v1391_v10  ;;  %v868_v10 = vld [vmem:[%s1658_s6 + $0x8] sm:$0xff] }
  0x4f   :  { %876 = vperm.xlu0 %1293, %v868_v10  }
  0x56   :  { %404 = vmatmul.f32.gmra.mxu0 %v1393_v11  ;;  %454 = vmatmul.f32.gmra.mxu1 %v1393_v11  ;;  %v867_v11 = vld [vmem:[%s1658_s6] sm:$0xff] }
  0x57   :  { %871 = vperm.xlu1 %1294, %v867_v11  }
  0x5e   :  { %408 = vmatmul.f32.gmra.mxu0 %v1407_v24  ;;  %458 = vmatmul.f32.gmra.mxu1 %v1407_v24 }
  0x63   :  { %v68_v26 = vpop.permute.xlu2 %67 }
  0x66   :  { %412 = vmatmul.f32.gmra.mxu0 %v1421_v35  ;;  %462 = vmatmul.f32.gmra.mxu1 %v1421_v35 }
  0x6b   :  { %v63_v34 = vpop.permute.xlu2 %62 }
  0x6e   :  { %416 = vmatmul.f32.gmra.mxu0 %v1432_v43  ;;  %466 = vmatmul.f32.gmra.mxu1 %v1432_v43 }
  0x74   :  { %v78_v13 = vpop.permute.xlu1 %77  ;;  %v1481_v15 = vpop.permute.xlu0 %87 }
  0x76   :  { %420 = vmatmul.f32.gmra.mxu0 %v176_v51  ;;  %470 = vmatmul.f32.gmra.mxu1 %v176_v51 }
  0x7c   :  { %v73_v16 = vpop.permute.xlu1 %72 }
  0x7d   :  { %v83_v18 = vpop.permute.xlu0 %82 }
  0x7e   :  { %424 = vmatmul.f32.gmra.mxu0 %v184_v58  ;;  %474 = vmatmul.f32.gmra.mxu1 %v184_v58 }
  0x84   :  { %v53_v19 = vpop.permute.xlu1 %52 }
  0x85   :  { %v58_v28 = vpop.permute.xlu0 %57 }
  0x86   :  { %428 = vmatmul.f32.gmra.mxu0 %v192_v1  ;;  %478 = vmatmul.f32.gmra.mxu1 %v192_v1 }
  0x8b   :  { %v142_v20 = vpop.f32.mrf.mxu0  ;;  %v224_v21 = vpop.f32.mrf.mxu1 }
  0x8c   :  { %v143_v22 = vadd.f32 %v142_v20, %v53_v19  ;;  %v276_v23 = vpop.f32.mrf.mxu2 }
  0x8d   :  { %v335_v25 = vpop.f32.mrf.mxu3 }
  0x8e   :  { %v225_v24 = vadd.f32 %v224_v21, %v143_v22 }
  0x90   :  { %v277_v27 = vadd.f32 %v276_v23, %v225_v24 }
  0x92   :  { %v336_v29 = vadd.f32 %v335_v25, %v277_v27 }
  0x93   :  { %v150_v30 = vpop.f32.mrf.mxu0  ;;  %v228_v31 = vpop.f32.mrf.mxu1 }
  0x94   :  { %v151_v32 = vadd.f32 %v150_v30, %v58_v28  ;;  %v281_v54 = vpop.f32.mrf.mxu2 }
  0x95   :  { %v341_v56 = vpop.f32.mrf.mxu3 }
  0x96   :  { %v1486_v33 = vadd.f32 %v228_v31, %v151_v32 }
  0x9b   :  { %v158_v35 = vpop.f32.mrf.mxu0  ;;  %v232_v36 = vpop.f32.mrf.mxu1 }
  0x9c   :  { %v159_v37 = vadd.f32 %v158_v35, %v63_v34  ;;  %v286_v59 = vpop.f32.mrf.mxu2 }
  0x9d   :  { %v347_v62 = vpop.f32.mrf.mxu3 }
  0x9e   :  { %v233_v38 = vadd.f32 %v232_v36, %v159_v37  ;;  %v282_v36 = vadd.f32 %v281_v54, %v1486_v33  ;;  %v490_v33 = vld [vmem:[%s1655_s3] sm:$0xff] }
  0xa3   :  { %v166_v39 = vpop.f32.mrf.mxu0  ;;  %v236_v40 = vpop.f32.mrf.mxu1 }
  0xa4   :  { %v167_v41 = vadd.f32 %v166_v39, %v68_v26  ;;  %v291_v1 = vpop.f32.mrf.mxu2  ;;  %v287_v26 = vadd.f32 %v286_v59, %v233_v38  ;;  %v520_v59 = vsel %vm518_vm2, %v490_v33, 0 }
  0xa5   :  { %v353_v4 = vpop.f32.mrf.mxu3 }
  0xa6   :  { %v237_v42 = vadd.f32 %v236_v40, %v167_v41  ;;  %v348_v40 = vadd.f32 %v347_v62, %v287_v26 }
  0xa8   :  { %v292_v24 = vadd.f32 %v291_v1, %v237_v42 }
  0xaa   :  { %v354_v37 = vadd.f32 %v353_v4, %v292_v24 }
  0xab   :  { %v174_v43 = vpop.f32.mrf.mxu0  ;;  %v240_v44 = vpop.f32.mrf.mxu1 }
  0xac   :  { %v175_v45 = vadd.f32 %v174_v43, %v73_v16  ;;  %v296_v7 = vpop.f32.mrf.mxu2 }
  0xad   :  { %v359_v8 = vpop.f32.mrf.mxu3 }
  0xae   :  { %v241_v46 = vadd.f32 %v240_v44, %v175_v45 }
  0xb0   :  { %v297_v21 = vadd.f32 %v296_v7, %v241_v46  ;;  %v342_v46 = vadd.f32 %v341_v56, %v282_v36 }
  0xb2   :  { %v360_v27 = vadd.f32 %v359_v8, %v297_v21 }
  0xb3   :  { %v182_v47 = vpop.f32.mrf.mxu0  ;;  %v244_v48 = vpop.f32.mrf.mxu1 }
  0xb4   :  { %v183_v49 = vadd.f32 %v182_v47, %v78_v13  ;;  %v301_v11 = vpop.f32.mrf.mxu2 }
  0xb5   :  { %v365_v12 = vpop.f32.mrf.mxu3 }
  0xb6   :  { %v245_v50 = vadd.f32 %v244_v48, %v183_v49 }
  0xb8   :  { %v302_v19 = vadd.f32 %v301_v11, %v245_v50 }
  0xba   :  { %v366_v25 = vadd.f32 %v365_v12, %v302_v19 }
  0xbb   :  { %v190_v51 = vpop.f32.mrf.mxu0  ;;  %v248_v52 = vpop.f32.mrf.mxu1 }
  0xbc   :  { %v191_v53 = vadd.f32 %v190_v51, %v83_v18  ;;  %v306_v16 = vpop.f32.mrf.mxu2 }
  0xbd   :  { %v371_v20 = vpop.f32.mrf.mxu3 }
  0xbe   :  { %v249_v55 = vadd.f32 %v248_v52, %v191_v53 }
  0xc0   :  { %v307_v23 = vadd.f32 %v306_v16, %v249_v55 }
  0xc3   :  { %v198_v57 = vpop.f32.mrf.mxu0  ;;  %v252_v58 = vpop.f32.mrf.mxu1 }
  0xc4   :  { %v199_v22 = vadd.f32 %v198_v57, %v1481_v15  ;;  %v311_v30 = vpop.f32.mrf.mxu2 }
  0xc5   :  { %v377_v43 = vpop.f32.mrf.mxu3 }
  0xc6   :  { %v253_v28 = vadd.f32 %v252_v58, %v199_v22 }
  0xc8   :  { %v312_v41 = vadd.f32 %v311_v30, %v253_v28 }
  0xca   :  { %v378_v48 = vadd.f32 %v377_v43, %v312_v41 }
  0xcb   :  { %v401_v60 = vpop.f32.mrf.mxu0  ;;  %v451_v61 = vpop.f32.mrf.mxu1 }
  0xcc   :  { %v402_v63 = vadd.f32 %v401_v60, %v336_v29  ;;  %v372_v29 = vadd.f32 %v371_v20, %v307_v23 }
  0xce   :  { %v1488_v0 = vadd.f32 %v451_v61, %v402_v63 }
  0xd3   :  { %v405_v2 = vpop.f32.mrf.mxu0  ;;  %v455_v3 = vpop.f32.mrf.mxu1 }
  0xd4   :  { %v406_v49 = vadd.f32 %v405_v2, %v342_v46 }
  0xd6   :  { %v456_v56 = vadd.f32 %v455_v3, %v406_v49 }
  0xdb   :  { %v409_v5 = vpop.f32.mrf.mxu0  ;;  %v459_v6 = vpop.f32.mrf.mxu1 }
  0xdc   :  { %v410_v45 = vadd.f32 %v409_v5, %v348_v40  ;;  %v1505_v5 = vand.u32 4294901760, %v520_v59 }
  0xde   :  { %v460_v52 = vadd.f32 %v459_v6, %v410_v45  ;;  %v483_v6 = vmax.f32 %v456_v56, 0.0  ;;  %v1530_v16 = vsub.f32 %v520_v59, %v1505_v5 }
  0xe0   :  { %v484_v63 = vmax.f32 %v460_v52, 0.0  ;;  %v557_v26 = vand.u32 4294901760, %v1530_v16 }
  0xe2   :  { %v1518_v11 = vand.u32 4294901760, %v484_v63 }
  0xe3   :  { %v413_v9 = vpop.f32.mrf.mxu0  ;;  %v463_v10 = vpop.f32.mrf.mxu1 }
  0xe4   :  { %v414_v15 = vadd.f32 %v413_v9, %v354_v37  ;;  %v491_v9 = vld [vmem:[%s1655_s3 + $0x8] sm:$0xff]  ;;  %v1545_v22 = vsub.f32 %v484_v63, %v1518_v11 }
  0xe6   :  { %v464_v50 = vadd.f32 %v463_v10, %v414_v15  ;;  %v482_v10 = vmax.f32 %v1488_v0, 0.0  ;;  %v1533_v0 = vand.u32 4294901760, %v483_v6 }
  0xe8   :  { %v485_v60 = vmax.f32 %v464_v50, 0.0  ;;  %v1542_v21 = vand.u32 4294901760, %v482_v10  ;;  %v1556_v28 = vsub.f32 %v483_v6, %v1533_v0 }
  0xea   :  { %v1507_v7 = vand.u32 4294901760, %v485_v60 }
  0xeb   :  { %v417_v13 = vpop.f32.mrf.mxu0  ;;  %v467_v14 = vpop.f32.mrf.mxu1 }
  0xec   :  { %v418_v32 = vadd.f32 %v417_v13, %v360_v27 }
  0xee   :  { %v468_v38 = vadd.f32 %v467_v14, %v418_v32  ;;  %v492_v32 = vld [vmem:[%s1655_s3 + $0x10] sm:$0xff] }
  0xef   :  { %v526_v41 = vsel %vm518_vm2, %v492_v32, 0 }
  0xf0   :  { %v486_v53 = vmax.f32 %v468_v38, 0.0 }
  0xf2   :  { %v1500_v1 = vand.u32 4294901760, %v486_v53 }
  0xf3   :  { %v421_v17 = vpop.f32.mrf.mxu0  ;;  %v471_v18 = vpop.f32.mrf.mxu1 }
  0xf4   :  { %v422_v31 = vadd.f32 %v421_v17, %v366_v25  ;;  %v1521_v12 = vsub.f32 %v486_v53, %v1500_v1  ;;  %v523_v17 = vsel %vm518_vm2, %v491_v9, 0 }
  0xf5   :  { %v1552_v27 = vand.u32 4294901760, %v523_v17 }
  0xf6   :  { %v472_v44 = vadd.f32 %v471_v18, %v422_v31  ;;  %v1536_v18 = vsub.f32 %v485_v60, %v1507_v7  ;;  %v616_v23 = vand.u32 4294901760, %v1521_v12 }
  0xf7   :  { %v1575_v40 = vsub.f32 %v523_v17, %v1552_v27 }
  0xf8   :  { %v487_v51 = vmax.f32 %v472_v44, 0.0  ;;  %v622_v31 = vand.u32 4294901760, %v1536_v18  ;;  %v617_v37 = vsub.f32 %v1521_v12, %v616_v23  ;;  %v634_v44 = vand.u32 4294901760, %v1556_v28 }
  0xfa   :  { %v1498_v61 = vand.u32 4294901760, %v487_v51  ;;  %v623_v15 = vsub.f32 %v1536_v18, %v622_v31  ;;  %v618_v38 = vand.u32 4294901760, %v617_v37  ;;  %v635_v50 = vsub.f32 %v1556_v28, %v634_v44 }
  0xfb   :  { %v425_v34 = vpop.f32.mrf.mxu0  ;;  %v475_v35 = vpop.f32.mrf.mxu1 }
  0xfc   :  { %v426_v39 = vadd.f32 %v425_v34, %v372_v29  ;;  %v1510_v8 = vsub.f32 %v487_v51, %v1498_v61  ;;  %v1565_v34 = vsub.f32 %v482_v10, %v1542_v21  ;;  %v624_v49 = vand.u32 4294901760, %v623_v15  ;;  %v493_v51 = vld [vmem:[%s1655_s3 + $0x18] sm:$0xff] }
  0xfe   :  { %v476_v42 = vadd.f32 %v475_v35, %v426_v39  ;;  %v610_v20 = vand.u32 4294901760, %v1510_v8  ;;  %v628_v35 = vand.u32 4294901760, %v1545_v22  ;;  %v558_v39 = vsub.f32 %v1530_v16, %v557_v26 }
  0xff   :  { %v640_v45 = vand.u32 4294901760, %v1565_v34 }
 0x100   :  { %v488_v47 = vmax.f32 %v476_v42, 0.0  ;;  %v611_v30 = vsub.f32 %v1510_v8, %v610_v20  ;;  %v629_v42 = vsub.f32 %v1545_v22, %v628_v35  ;;  %v559_v46 = vand.u32 4294901760, %v558_v39 }
 0x101   :  { %v641_v52 = vsub.f32 %v1565_v34, %v640_v45 }
 0x102   :  { %v1495_v57 = vand.u32 4294901760, %v488_v47  ;;  %v612_v43 = vand.u32 4294901760, %v611_v30  ;;  %v630_v33 = vand.u32 4294901760, %v629_v42 }
 0x103   :  { %v429_v54 = vpop.f32.mrf.mxu0  ;;  %v479_v55 = vpop.f32.mrf.mxu1  ;;  %v642_v59 = vand.u32 4294901760, %v641_v52 }
 0x104   :  { %v430_v58 = vadd.f32 %v429_v54, %v378_v48  ;;  %v1503_v2 = vsub.f32 %v488_v47, %v1495_v57  ;;  %v565_v47 = vand.u32 4294901760, %v1575_v40  ;;  %v571_v48 = vand.u32 4294901760, %v526_v41 }
 0x106   :  { %v480_v62 = vadd.f32 %v479_v55, %v430_v58  ;;  %v604_v14 = vand.u32 4294901760, %v1503_v2  ;;  %v566_v53 = vsub.f32 %v1575_v40, %v565_v47  ;;  %v572_v54 = vsub.f32 %v526_v41, %v571_v48  ;;  %v865_v41 = vld [vmem:[%s1657_s5] sm:$0xff] }
 0x107   :  { %v529_v55 = vsel %vm518_vm2, %v493_v51, 0  ;;  %v636_v58 = vand.u32 4294901760, %v635_v50 }
 0x108   :  { %v489_v4 = vmax.f32 %v480_v62, 0.0  ;;  %v605_v25 = vsub.f32 %v1503_v2, %v604_v14  ;;  %v567_v56 = vand.u32 4294901760, %v566_v53  ;;  %v573_v60 = vand.u32 4294901760, %v572_v54 }
 0x109   :  { %v579_v62 = vand.u32 4294901760, %v529_v55 }
 0x10a   :  { %v1512_v3 = vand.u32 4294901760, %v489_v4  ;;  %v606_v36 = vand.u32 4294901760, %v605_v25  ;;  %v574_v63 = vsub.f32 %v572_v54, %v573_v60 }
 0x10c   :  { %v1524_v13 = vsub.f32 %v489_v4, %v1512_v3  ;;  %540 = vmatpush.msrb.mxu2 %v1512_v3  ;;  %829 = vmatpush.msra.mxu1 %v1512_v3  ;;  %v575_v4 = vand.u32 4294901760, %v574_v63 }
 0x10e   :  { %542 = vmatpush.msrb.mxu2 %v1495_v57  ;;  %831 = vmatpush.msra.mxu1 %v1495_v57  ;;  %v598_v19 = vand.u32 4294901760, %v1524_v13 }
 0x110   :  { %544 = vmatpush.msrb.mxu2 %v1498_v61  ;;  %774 = vmatpush.msra.mxu0 %v598_v19  ;;  %v599_v24 = vsub.f32 %v1524_v13, %v598_v19  ;;  %v506_v19 = vpop.permute.xlu1 %505 }
 0x111   :  { %833 = vmatpush.msra.mxu1 %v1498_v61 }
 0x112   :  { %546 = vmatpush.msrb.mxu2 %v1500_v1  ;;  %778 = vmatpush.msra.mxu0 %v604_v14  ;;  %v600_v29 = vand.u32 4294901760, %v599_v24 }
 0x113   :  { %835 = vmatpush.msra.mxu1 %v1500_v1 }
 0x114   :  { %548 = vmatpush.msrb.mxu2 %v1507_v7  ;;  %601 = vmatpush.msrb.mxu3 %v600_v29 }
 0x115   :  { %782 = vmatpush.msra.mxu0 %v610_v20  ;;  %837 = vmatpush.msra.mxu1 %v1507_v7 }
 0x116   :  { %550 = vmatpush.msrb.mxu2 %v1518_v11  ;;  %607 = vmatpush.msrb.mxu3 %v606_v36 }
 0x117   :  { %786 = vmatpush.msra.mxu0 %v616_v23  ;;  %839 = vmatpush.msra.mxu1 %v1518_v11 }
 0x118   :  { %552 = vmatpush.msrb.mxu2 %v1533_v0  ;;  %613 = vmatpush.msrb.mxu3 %v612_v43 }
 0x119   :  { %790 = vmatpush.msra.mxu0 %v622_v31  ;;  %841 = vmatpush.msra.mxu1 %v1533_v0 }
 0x11a   :  { %554 = vmatpush.msrb.mxu2 %v1542_v21  ;;  %619 = vmatpush.msrb.mxu3 %v618_v38  ;;  %v881_v38 = vsel %vm879_vm3, %v865_v41, 0 }
 0x11b   :  { %794 = vmatpush.msra.mxu0 %v628_v35  ;;  %843 = vmatpush.msra.mxu1 %v1542_v21  ;;  %v1631_v50 = vand.u32 4294901760, %v881_v38 }
 0x11c   :  { %560 = vmatmul.f32.vlgmr.msrb.gmra.mxu2 %v559_v46  ;;  %625 = vmatpush.msrb.mxu3 %v624_v49 }
 0x11d   :  { %671 = vmatpush.msra.mxu2 %v1524_v13  ;;  %798 = vmatpush.msra.mxu0 %v634_v44 }
 0x11e   :  { %631 = vmatpush.msrb.mxu3 %v630_v33  ;;  %845 = vmatmul.f32.vlgmr.msra.gmra.mxu1 %v1505_v5 }
 0x11f   :  { %674 = vmatpush.msra.mxu2 %v1503_v2  ;;  %802 = vmatpush.msra.mxu0 %v640_v45  ;;  %v580_v2 = vsub.f32 %v529_v55, %v579_v62  ;;  %v866_v55 = vld [vmem:[%s1657_s5 + $0x8] sm:$0xff] }
 0x120   :  { %637 = vmatpush.msrb.mxu3 %v636_v58  ;;  %804 = vmatmul.f32.vlgmr.msra.gmra.mxu0 %v1505_v5 }
 0x121   :  { %677 = vmatpush.msra.mxu2 %v1510_v8  ;;  %v581_v6 = vand.u32 4294901760, %v580_v2 }
 0x122   :  { %643 = vmatpush.msrb.mxu3 %v642_v59 }
 0x123   :  { %680 = vmatpush.msra.mxu2 %v1521_v12  ;;  %645 = vmatmul.f32.vlgmr.msrb.gmra.mxu3 %v1505_v5 }
 0x124   :  { %568 = vmatmul.f32.gmra.mxu2 %v567_v56  ;;  %723 = vmatpush.msra.mxu3 %v1512_v3 }
 0x125   :  { %683 = vmatpush.msra.mxu2 %v1536_v18 }
 0x126   :  { %725 = vmatpush.msra.mxu3 %v1495_v57  ;;  %849 = vmatmul.f32.gmra.mxu1 %v1552_v27  ;;  %v582_v57 = vsub.f32 %v580_v2, %v581_v6 }
 0x127   :  { %686 = vmatpush.msra.mxu2 %v1545_v22 }
 0x128   :  { %727 = vmatpush.msra.mxu3 %v1498_v61  ;;  %808 = vmatmul.f32.gmra.mxu0 %v1552_v27  ;;  %v583_v61 = vand.u32 4294901760, %v582_v57 }
 0x129   :  { %689 = vmatpush.msra.mxu2 %v1556_v28 }
 0x12a   :  { %729 = vmatpush.msra.mxu3 %v1500_v1 }
 0x12b   :  { %692 = vmatpush.msra.mxu2 %v1565_v34  ;;  %649 = vmatmul.f32.gmra.mxu3 %v1552_v27 }
 0x12c   :  { %576 = vmatmul.f32.gmra.mxu2 %v575_v4  ;;  %731 = vmatpush.msra.mxu3 %v1507_v7  ;;  %v884_v4 = vsel %vm879_vm3, %v866_v55, 0 }
 0x12e   :  { %733 = vmatpush.msra.mxu3 %v1518_v11  ;;  %853 = vmatmul.f32.gmra.mxu1 %v571_v48 }
 0x130   :  { %735 = vmatpush.msra.mxu3 %v1533_v0  ;;  %812 = vmatmul.f32.gmra.mxu0 %v571_v48 }
 0x132   :  { %737 = vmatpush.msra.mxu3 %v1542_v21 }
 0x133   :  { %653 = vmatmul.f32.gmra.mxu3 %v571_v48 }
 0x134   :  { %584 = vmatmul.f32.gmra.mxu2 %v583_v61 }
 0x136   :  { %857 = vmatmul.f32.gmra.mxu1 %v579_v62 }
 0x138   :  { %816 = vmatmul.f32.gmra.mxu0 %v579_v62 }
 0x13b   :  { %657 = vmatmul.f32.gmra.mxu3 %v579_v62 }
 0x13c   :  { %695 = vmatmul.f32.vlgmr.msra.gmra.mxu2 %v1530_v16  ;;  %v516_v16 = vpop.permute.xlu2 %515 }
 0x143   :  { %741 = vmatmul.f32.vlgmr.msra.gmra.mxu3 %v557_v26  ;;  %v511_v26 = vpop.permute.xlu0 %510 }
 0x144   :  { %700 = vmatmul.f32.gmra.mxu2 %v1575_v40  ;;  %v501_v22 = vpop.permute.xlu2 %500 }
 0x14b   :  { %747 = vmatmul.f32.gmra.mxu3 %v565_v47 }
 0x14c   :  { %705 = vmatmul.f32.gmra.mxu2 %v572_v54 }
 0x153   :  { %753 = vmatmul.f32.gmra.mxu3 %v573_v60  ;;  %v1637_v60 = vsub.f32 %v881_v38, %v1631_v50  ;;  %v877_v38 = vpop.permute.xlu0 %876 }
 0x154   :  { %710 = vmatmul.f32.gmra.mxu2 %v580_v2 }
 0x155   :  { %v908_v61 = vand.u32 4294901760, %v1637_v60 }
 0x15b   :  { %759 = vmatmul.f32.gmra.mxu3 %v581_v6 }
 0x19b   :  { %v846_v14 = vpop.f32.mrf.mxu1 }
 0x19d   :  { %v805_v13 = vpop.f32.mrf.mxu0 }
 0x19f   :  { %v561_v1 = vpop.f32.mrf.mxu2 }
 0x1a0   :  { %v562_v24 = vadd.f32 %v561_v1, %v501_v22  ;;  %v914_v1 = vand.u32 4294901760, %v884_v4 }
 0x1a3   :  { %v850_v20 = vpop.f32.mrf.mxu1 }
 0x1a5   :  { %v809_v18 = vpop.f32.mrf.mxu0 }
 0x1a6   :  { %v646_v5 = vpop.f32.mrf.mxu3 }
 0x1a7   :  { %v569_v7 = vpop.f32.mrf.mxu2  ;;  %v647_v28 = vadd.f32 %v646_v5, %v562_v24 }
 0x1a8   :  { %v570_v21 = vadd.f32 %v569_v7, %v506_v19 }
 0x1ab   :  { %v854_v40 = vpop.f32.mrf.mxu1 }
 0x1ad   :  { %v813_v35 = vpop.f32.mrf.mxu0 }
 0x1ae   :  { %v650_v8 = vpop.f32.mrf.mxu3 }
 0x1af   :  { %v577_v3 = vpop.f32.mrf.mxu2  ;;  %v651_v25 = vadd.f32 %v650_v8, %v570_v21 }
 0x1b0   :  { %v578_v29 = vadd.f32 %v577_v3, %v511_v26 }
 0x1b3   :  { %v858_v56 = vpop.f32.mrf.mxu1 }
 0x1b5   :  { %v817_v54 = vpop.f32.mrf.mxu0 }
 0x1b6   :  { %v654_v9 = vpop.f32.mrf.mxu3 }
 0x1b7   :  { %v585_v10 = vpop.f32.mrf.mxu2  ;;  %v655_v31 = vadd.f32 %v654_v9, %v578_v29 }
 0x1b8   :  { %v586_v44 = vadd.f32 %v585_v10, %v516_v16  ;;  %v909_v10 = vsub.f32 %v1637_v60, %v908_v61 }
 0x1be   :  { %v658_v11 = vpop.f32.mrf.mxu3 }
 0x1bf   :  { %v696_v12 = vpop.f32.mrf.mxu2  ;;  %v659_v47 = vadd.f32 %v658_v11, %v586_v44  ;;  %v915_v11 = vsub.f32 %v884_v4, %v914_v1 }
 0x1c0   :  { %v697_v32 = vadd.f32 %v696_v12, %v647_v28 }
 0x1c6   :  { %v742_v17 = vpop.f32.mrf.mxu3 }
 0x1c7   :  { %v701_v0 = vpop.f32.mrf.mxu2  ;;  %v743_v36 = vadd.f32 %v742_v17, %v697_v32 }
 0x1c8   :  { %v702_v30 = vadd.f32 %v701_v0, %v651_v25  ;;  %v910_v0 = vand.u32 4294901760, %v909_v10 }
 0x1c9   :  { %v806_v42 = vadd.f32 %v805_v13, %v743_v36 }
 0x1cb   :  { %v847_v51 = vadd.f32 %v846_v14, %v806_v42 }
 0x1cd   :  { %v861_v62 = vmax.f32 %v847_v51, 0.0 }
 0x1ce   :  { %v748_v23 = vpop.f32.mrf.mxu3 }
 0x1cf   :  { %v706_v27 = vpop.f32.mrf.mxu2  ;;  %v749_v34 = vadd.f32 %v748_v23, %v702_v30  ;;  %v904_v5 = vand.u32 4294901760, %v861_v62 }
 0x1d0   :  { %v707_v37 = vadd.f32 %v706_v27, %v655_v31 }
 0x1d1   :  { %v810_v43 = vadd.f32 %v809_v18, %v749_v34  ;;  %v954_v12 = vsub.f32 %v861_v62, %v904_v5  ;;  %v916_v18 = vand.u32 4294901760, %v915_v11 }
 0x1d3   :  { %v851_v48 = vadd.f32 %v850_v20, %v810_v43  ;;  %v955_v21 = vand.u32 4294901760, %v954_v12  ;;  %v917_v24 = vsub.f32 %v915_v11, %v916_v18 }
 0x1d5   :  { %v862_v58 = vmax.f32 %v851_v48, 0.0  ;;  %v956_v26 = vsub.f32 %v954_v12, %v955_v21  ;;  %v918_v28 = vand.u32 4294901760, %v917_v24 }
 0x1d6   :  { %v754_v39 = vpop.f32.mrf.mxu3 }
 0x1d7   :  { %v755_v15 = vadd.f32 %v754_v39, %v707_v37  ;;  %v711_v46 = vpop.f32.mrf.mxu2  ;;  %v902_v6 = vand.u32 4294901760, %v862_v58  ;;  %v957_v29 = vand.u32 4294901760, %v956_v26  ;;  %v1104_v39 = vld [vmem:[%s1659_s7] sm:$0xf]  ;;  %s1323_s7 = smov [#allocation2]  }
 0x1d8   :  { %v712_v33 = vadd.f32 %v711_v46, %v659_v47  ;;  %s1280_s0 = sshll.u32 %s1323_s7, 4  ;;  %s1281_s0 = int_to_ptr.vmem [resolvable:$true] %s1280_s0 }
 0x1d9   :  { %v814_v45 = vadd.f32 %v813_v35, %v755_v15  ;;  %v948_v3 = vsub.f32 %v862_v58, %v902_v6  ;;  %v872_v35 = vpop.permute.xlu1 %871  ;;  %v1113_v15 = vsel %vm1111_vm4, %v1104_v39, 0 }
 0x1da   :  { %v1133_v46 = vand.u32 4294901760, %v1113_v15 }
 0x1db   :  { %v855_v49 = vadd.f32 %v854_v40, %v814_v45  ;;  %v949_v17 = vand.u32 4294901760, %v948_v3 }
 0x1dd   :  { %v863_v52 = vmax.f32 %v855_v49, 0.0  ;;  %v950_v23 = vsub.f32 %v948_v3, %v949_v17 }
 0x1de   :  { %v760_v53 = vpop.f32.mrf.mxu3 }
 0x1df   :  { %v761_v59 = vadd.f32 %v760_v53, %v712_v33  ;;  %v900_v63 = vand.u32 4294901760, %v863_v52  ;;  %v951_v27 = vand.u32 4294901760, %v950_v23  ;;  %v1134_v33 = vsub.f32 %v1113_v15, %v1133_v46 }
 0x1e1   :  { %v818_v2 = vadd.f32 %v817_v54, %v761_v59  ;;  %v942_v7 = vsub.f32 %v863_v52, %v900_v63 }
 0x1e3   :  { %v859_v57 = vadd.f32 %v858_v56, %v818_v2  ;;  %v943_v14 = vand.u32 4294901760, %v942_v7  ;;  %v1135_v56 = vand.u32 4294901760, %v1134_v33 }
 0x1e5   :  { %v864_v8 = vmax.f32 %v859_v57, 0.0  ;;  %v944_v20 = vsub.f32 %v942_v7, %v943_v14  ;;  %v1136_v2 = vsub.f32 %v1134_v33, %v1135_v56 }
 0x1e7   :  { %v898_v9 = vand.u32 4294901760, %v864_v8  ;;  %v945_v25 = vand.u32 4294901760, %v944_v20 }
 0x1e9   :  { %v936_v13 = vsub.f32 %v864_v8, %v898_v9  ;;  %899 = vmatpush.msrb.mxu2 %v898_v9  ;;  %1086 = vmatpush.msrb.mxu1 %v898_v9 }
 0x1eb   :  { %v937_v16 = vand.u32 4294901760, %v936_v13  ;;  %901 = vmatpush.msrb.mxu2 %v900_v63  ;;  %1088 = vmatpush.msrb.mxu1 %v900_v63 }
 0x1ed   :  { %v938_v19 = vsub.f32 %v936_v13, %v937_v16  ;;  %903 = vmatpush.msrb.mxu2 %v902_v6  ;;  %1051 = vmatpush.msrb.mxu0 %v937_v16 }
 0x1ee   :  { %1090 = vmatpush.msrb.mxu1 %v902_v6 }
 0x1ef   :  { %905 = vmatpush.msrb.mxu2 %v904_v5  ;;  %1055 = vmatpush.msrb.mxu0 %v943_v14  ;;  %v939_v22 = vand.u32 4294901760, %v938_v19 }
 0x1f0   :  { %1092 = vmatpush.msrb.mxu1 %v904_v5  ;;  %911 = vmatmul.f32.vlgmr.msrb.gmra.mxu2 %v910_v0 }
 0x1f1   :  { %982 = vmatpush.msra.mxu2 %v936_v13  ;;  %940 = vmatpush.msrb.mxu3 %v939_v22 }
 0x1f2   :  { %1059 = vmatpush.msrb.mxu0 %v949_v17  ;;  %1094 = vmatmul.f32.vlgmr.msrb.gmra.mxu1 %v1631_v50 }
 0x1f3   :  { %985 = vmatpush.msra.mxu2 %v942_v7  ;;  %946 = vmatpush.msrb.mxu3 %v945_v25 }
 0x1f4   :  { %1063 = vmatpush.msrb.mxu0 %v955_v21 }
 0x1f5   :  { %988 = vmatpush.msra.mxu2 %v948_v3  ;;  %952 = vmatpush.msrb.mxu3 %v951_v27 }
 0x1f6   :  { %1065 = vmatmul.f32.vlgmr.msrb.gmra.mxu0 %v1631_v50 }
 0x1f7   :  { %991 = vmatpush.msra.mxu2 %v954_v12  ;;  %958 = vmatpush.msrb.mxu3 %v957_v29  ;;  %v1109_v12 = vpop.permute.xlu2 %1108 }
 0x1f8   :  { %919 = vmatmul.f32.gmra.mxu2 %v918_v28  ;;  %960 = vmatmul.f32.vlgmr.msrb.gmra.mxu3 %v1631_v50 }
 0x1f9   :  { %1016 = vmatpush.msra.mxu3 %v898_v9 }
 0x1fa   :  { %1098 = vmatmul.f32.gmra.mxu1 %v914_v1 }
 0x1fb   :  { %1018 = vmatpush.msra.mxu3 %v900_v63 }
 0x1fd   :  { %1020 = vmatpush.msra.mxu3 %v902_v6 }
 0x1fe   :  { %1069 = vmatmul.f32.gmra.mxu0 %v914_v1 }
 0x1ff   :  { %1022 = vmatpush.msra.mxu3 %v904_v5 }
 0x200   :  { %964 = vmatmul.f32.gmra.mxu3 %v914_v1  ;;  %994 = vmatmul.f32.vlgmr.msra.gmra.mxu2 %v1637_v60 }
 0x208   :  { %999 = vmatmul.f32.gmra.mxu2 %v915_v11  ;;  %1026 = vmatmul.f32.vlgmr.msra.gmra.mxu3 %v908_v61  ;;  %v1137_v61 = vand.u32 4294901760, %v1136_v2 }
 0x210   :  { %1032 = vmatmul.f32.gmra.mxu3 %v916_v18 }
 0x26f   :  { %v1095_v42 = vpop.f32.mrf.mxu1 }
 0x273   :  { %v912_v30 = vpop.f32.mrf.mxu2  ;;  %v1066_v41 = vpop.f32.mrf.mxu0 }
 0x274   :  { %v913_v37 = vadd.f32 %v912_v30, %v872_v35 }
 0x277   :  { %v1099_v59 = vpop.f32.mrf.mxu1 }
 0x27b   :  { %v920_v31 = vpop.f32.mrf.mxu2  ;;  %v961_v32 = vpop.f32.mrf.mxu3 }
 0x27c   :  { %v962_v40 = vadd.f32 %v961_v32, %v913_v37  ;;  %v921_v47 = vadd.f32 %v920_v31, %v877_v38  ;;  %v1070_v55 = vpop.f32.mrf.mxu0 }
 0x283   :  { %v965_v34 = vpop.f32.mrf.mxu3  ;;  %v995_v36 = vpop.f32.mrf.mxu2 }
 0x284   :  { %v996_v43 = vadd.f32 %v995_v36, %v962_v40  ;;  %v966_v50 = vadd.f32 %v965_v34, %v921_v47 }
 0x28b   :  { %v1027_v44 = vpop.f32.mrf.mxu3  ;;  %v1000_v49 = vpop.f32.mrf.mxu2 }
 0x28c   :  { %v1028_v45 = vadd.f32 %v1027_v44, %v996_v43  ;;  %v1001_v52 = vadd.f32 %v1000_v49, %v966_v50 }
 0x28e   :  { %v1067_v48 = vadd.f32 %v1066_v41, %v1028_v45 }
 0x290   :  { %v1096_v51 = vadd.f32 %v1095_v42, %v1067_v48 }
 0x292   :  { %v1102_v53 = vmax.f32 %v1096_v51, 0.0 }
 0x293   :  { %v1033_v54 = vpop.f32.mrf.mxu3 }
 0x294   :  { %v1034_v58 = vadd.f32 %v1033_v54, %v1001_v52  ;;  %v1131_v60 = vand.u32 4294901760, %v1102_v53 }
 0x296   :  { %v1071_v62 = vadd.f32 %v1070_v55, %v1034_v58  ;;  %v1163_v4 = vsub.f32 %v1102_v53, %v1131_v60 }
 0x298   :  { %v1100_v63 = vadd.f32 %v1099_v59, %v1071_v62  ;;  %v1164_v5 = vand.u32 4294901760, %v1163_v4 }
 0x29a   :  { %v1103_v6 = vmax.f32 %v1100_v63, 0.0  ;;  %v1165_v3 = vsub.f32 %v1163_v4, %v1164_v5 }
 0x29c   :  { %v1129_v57 = vand.u32 4294901760, %v1103_v6  ;;  %v1166_v10 = vand.u32 4294901760, %v1165_v3 }
 0x29e   :  { %v1157_v1 = vsub.f32 %v1103_v6, %v1129_v57  ;;  %1130 = vmatpush.msrb.mxu2 %v1129_v57  ;;  %1266 = vmatpush.msra.mxu1 %v1129_v57 }
 0x2a0   :  { %v1158_v7 = vand.u32 4294901760, %v1157_v1  ;;  %1132 = vmatpush.msrb.mxu2 %v1131_v60  ;;  %1268 = vmatpush.msra.mxu1 %v1131_v60 }
 0x2a1   :  { %1138 = vmatmul.f32.vlgmr.msrb.gmra.mxu2 %v1137_v61  ;;  %1270 = vmatmul.f32.vlgmr.msra.gmra.mxu1 %v1133_v46 }
 0x2a2   :  { %v1159_v8 = vsub.f32 %v1157_v1, %v1158_v7  ;;  %1189 = vmatpush.msra.mxu2 %v1157_v1  ;;  %1241 = vmatpush.msra.mxu0 %v1158_v7 }
 0x2a4   :  { %1192 = vmatpush.msra.mxu2 %v1163_v4  ;;  %1245 = vmatpush.msra.mxu0 %v1164_v5  ;;  %v1160_v9 = vand.u32 4294901760, %v1159_v8 }
 0x2a5   :  { %1247 = vmatmul.f32.vlgmr.msra.gmra.mxu0 %v1133_v46 }
 0x2a6   :  { %1161 = vmatpush.msrb.mxu3 %v1160_v9 }
 0x2a8   :  { %1167 = vmatpush.msrb.mxu3 %v1166_v10 }
 0x2a9   :  { %1169 = vmatmul.f32.vlgmr.msrb.gmra.mxu3 %v1133_v46  ;;  %1195 = vmatmul.f32.vlgmr.msra.gmra.mxu2 %v1134_v33 }
 0x2aa   :  { %1214 = vmatpush.msra.mxu3 %v1129_v57 }
 0x2ac   :  { %1216 = vmatpush.msra.mxu3 %v1131_v60 }
 0x2b1   :  { %1220 = vmatmul.f32.vlgmr.msra.gmra.mxu3 %v1135_v56 }
 0x31e   :  { %v1271_v21 = vpop.f32.mrf.mxu1 }
 0x322   :  { %v1248_v19 = vpop.f32.mrf.mxu0 }
 0x324   :  { %v1139_v11 = vpop.f32.mrf.mxu2 }
 0x325   :  { %v1140_v14 = vadd.f32 %v1139_v11, %v1109_v12 }
 0x32c   :  { %v1170_v13 = vpop.f32.mrf.mxu3  ;;  %v1196_v17 = vpop.f32.mrf.mxu2 }
 0x32d   :  { %v1171_v16 = vadd.f32 %v1170_v13, %v1140_v14 }
 0x32f   :  { %v1197_v0 = vadd.f32 %v1196_v17, %v1171_v16 }
 0x334   :  { %v1221_v18 = vpop.f32.mrf.mxu3 }
 0x335   :  { %v1222_v20 = vadd.f32 %v1221_v18, %v1197_v0 }
 0x337   :  { %v1249_v22 = vadd.f32 %v1248_v19, %v1222_v20 }
 0x339   :  { %v1272_v23 = vadd.f32 %v1271_v21, %v1249_v22 }
 0x33b   :  { %1274 = vst [vmem:[#allocation2] sm:$0xf] %v1272_v23 }
 0x33c   :  { %1285 = dma.vmem_to_hbm [thread:$0]  %s1281_s0, 64, %s1283_s20, [#allocation3]  }
 0x33d   :  { %1320 = dma.done.wait [#allocation3], 64  }
 0x33e   :  { %1321 = vsyncadd [#allocation3], 4294967232 }
 0x33f   :  { %1290 = vsyncpa [#allocation3], 1 }

</bundles_post_ra>
